<compile_context>
chip_gen: v6e
topology: v6e:2x2x1
jax: 0.10.0
libtpu: 0.0.40
codegen_flags: <defaults>
</compile_context>

<pallas_src>
import jax
import jax.numpy as jnp
from jax.experimental import pallas as pl
from jax.experimental.pallas import tpu as pltpu

_LANE = 128
_SUBLANE = 8


def _relu_tanh_native_kernel(x_ref, o_ref):
    # Fused elementwise relu -> tanh in the input's native dtype (VPU + EUP).
    x = x_ref[...]
    o_ref[...] = jnp.tanh(jnp.maximum(x, 0)).astype(o_ref.dtype)


def _relu_tanh_f32_kernel(x_ref, o_ref):
    # f32-compute variant for sub-32-bit inputs on chips without bf16 VPU/EUP.
    x = x_ref[...].astype(jnp.float32)
    o_ref[...] = jnp.tanh(jnp.maximum(x, 0.0)).astype(o_ref.dtype)


def _round_up(a: int, b: int) -> int:
    return ((a + b - 1) // b) * b


def _round_down(a: int, b: int) -> int:
    return (a // b) * b


def _device_kind() -> str:
    try:
        return jax.devices()[0].device_kind.lower()
    except Exception:
        return ""


def _pick_blocks(n: int, f: int, itemsize: int, target_bytes: int):
    """Pick (bm, bc) block dims: full row width unless 8 rows exceed budget."""
    if f <= _LANE or f * _SUBLANE * itemsize <= target_bytes:
        bc = f                                      # full width: contiguous DMA
    else:
        bc = max(_LANE, _round_down(target_bytes // (_SUBLANE * itemsize), _LANE))

    row_budget = max(1, target_bytes // (bc * itemsize))
    if n <= _SUBLANE:
        bm = n                                      # block dim == full array dim
    else:
        bm = max(_SUBLANE, min(_round_down(row_budget, _SUBLANE),
                               _round_down(n, _SUBLANE)))
        # Megacore (v7x): make sure the grid has >= 2 blocks when possible.
        if pl.cdiv(n, bm) * pl.cdiv(f, bc) < 2:
            bm = max(_SUBLANE, _round_up(pl.cdiv(n, 2), _SUBLANE))
    return bm, bc


def remove_view_relu(x: jax.Array) -> jax.Array:
    """tanh(relu(x.reshape(N, -1))) computed in a tiled Pallas TPU kernel."""
    n = x.shape[0]
    x2 = x.reshape(n, -1)            # glue: the first torch .view(N, -1)
    if x2.size == 0:
        return x2
    N, F = x2.shape
    itemsize = jnp.dtype(x2.dtype).itemsize

    kind = _device_kind()
    newer = ("v6" in kind) or ("v7" in kind)
    target_bytes = (4 if newer else 2) * 1024 * 1024

    if x2.dtype == jnp.float32 or (newer and jnp.issubdtype(x2.dtype, jnp.floating)):
        kernel = _relu_tanh_native_kernel
    else:
        kernel = _relu_tanh_f32_kernel   # v5e & older: no bf16 VPU/EUP path

    bm, bc = _pick_blocks(N, F, itemsize, target_bytes)
    grid = (pl.cdiv(N, bm), pl.cdiv(F, bc))

    out = pl.pallas_call(
        kernel,
        out_shape=jax.ShapeDtypeStruct((N, F), x2.dtype),
        grid=grid,
        in_specs=[pl.BlockSpec((bm, bc), lambda i, j: (i, j))],
        out_specs=pl.BlockSpec((bm, bc), lambda i, j: (i, j)),
        compiler_params=pltpu.CompilerParams(
            dimension_semantics=("parallel", "parallel")),
        cost_estimate=pl.CostEstimate(
            flops=N * F,
            transcendentals=N * F,
            bytes_accessed=2 * N * F * itemsize),
    )(x2)

    # Glue: the second torch .view(N, -1) is a no-op on an (N, F) result.
    return out


if __name__ == "__main__":
    fwd = jax.jit(remove_view_relu)
    key_small, key_big = jax.random.split(jax.random.PRNGKey(0))

    # Matches the module's example input: torch.randn(3, 2).
    x_small = jax.random.normal(key_small, (3, 2), dtype=jnp.float32)
    y_small = jax.block_until_ready(fwd(x_small))
    ref_small = jnp.tanh(jnp.maximum(x_small.reshape(3, -1), 0.0))
    assert y_small.shape == (3, 2)
    assert jnp.allclose(y_small, ref_small, atol=1e-6, rtol=1e-6)

    # A modest non-128-aligned shape exercising the multi-block tiled path.
    x_big = jax.random.normal(key_big, (64, 300), dtype=jnp.float32)
    y_big = jax.block_until_ready(fwd(x_big))
    ref_big = jnp.tanh(jnp.maximum(x_big.reshape(64, -1), 0.0))
    assert y_big.shape == (64, 300)
    assert jnp.allclose(y_big, ref_big, atol=1e-6, rtol=1e-6)

    # NOTE: the original PyTorch forward has no `return` (the module returns
    # None); the wrapper returns the computed tanh(relu(x)) instead.
    print("KERNEL_OK")
</pallas_src>

<mosaic_0001>
module attributes {stable_mosaic.version = 11 : i64} {
  func.func @_relu_tanh_native_kernel(%arg0: i32, %arg1: i32, %arg2: memref<3x2xf32, #tpu.memory_space<vmem>>, %arg3: memref<3x2xf32, #tpu.memory_space<vmem>>) attributes {dimension_semantics = [#tpu.dimension_semantics<parallel>, #tpu.dimension_semantics<parallel>], iteration_bounds = array<i64: 1, 1>, scalar_prefetch = 0 : i64, scratch_operands = 0 : i64, tpu.core_type = #tpu.core_type<tc>, window_params = [{transform_indices = @transform_0, window_bounds = array<i64: 3, 2>}, {transform_indices = @transform_1, window_bounds = array<i64: 3, 2>}]} {
    %c0 = arith.constant 0 : index
    %c0_0 = arith.constant 0 : index
    %0 = vector.load %arg2[%c0, %c0_0] : memref<3x2xf32, #tpu.memory_space<vmem>>, vector<3x2xf32>
    %cst = arith.constant 0.000000e+00 : f32
    %1 = vector.broadcast %cst : f32 to vector<3x2xf32>
    %2 = arith.maximumf %0, %1 : vector<3x2xf32>
    %3 = math.tanh %2 : vector<3x2xf32>
    %c0_1 = arith.constant 0 : index
    %c0_2 = arith.constant 0 : index
    %4 = vector.load %arg3[%c0_1, %c0_2] : memref<3x2xf32, #tpu.memory_space<vmem>>, vector<3x2xf32>
    tpu.vector_store %arg3[%c0_1, %c0_2], %3 {strides = array<i32>} : memref<3x2xf32, #tpu.memory_space<vmem>>, vector<3x2xf32>,
    return
  }
  func.func @transform_0(%arg0: i32, %arg1: i32) -> (i32, i32) {
    %c0_i32 = arith.constant 0 : i32
    return %arg0, %arg1 : i32, i32
  }
  func.func @transform_1(%arg0: i32, %arg1: i32) -> (i32, i32) {
    %c0_i32 = arith.constant 0 : i32
    return %arg0, %arg1 : i32, i32
  }
}

</mosaic_0001>

<bundles_post_ra>
// kernel: remove_view_relu.1
= control target key start
LH: loop header
LB: loop body
LE: loop exit
PB: predicated region body
PF: predicated region fallthrough
CT: control target
= control target key end

     0   :  { %vm11_vm0 = vcmask 10240   ;;  %s35_s0 = inlined_call_operand.vmem [shape: f32[3,2], index: 0, kind: input, shape index: {}]   ;;  %s36_s1 = inlined_call_operand.vmem [shape: f32[3,2], index: 1, kind: output, shape index: {}]  }
   0x1   :  { %v8_v0 = vld [vmem:[%s35_s0] sm:$0x7] }
   0x2   :  { %v9_v1 = vmax.f32 %v8_v0, 0.0 }
   0x4   :  { %17 = vtanh.f32 %v9_v1 }
  0x11   :  { %v18_v2 = vpop.eup %17 }
  0x12   :  { %12 = vst.msk [vmem:[%s36_s1] sm:$0x7] %vm11_vm0, %v18_v2 }

</bundles_post_ra>
